<compile_context>
chip_gen: v5e
topology: v5e:2x2
jax: 0.10.0
libtpu: 0.0.40
codegen_flags: <defaults>
</compile_context>

<pallas_src>
import functools

import jax
import jax.numpy as jnp
from jax.experimental import pallas as pl
from jax.experimental.pallas import tpu as pltpu


def _round_up(x, m):
    return ((x + m - 1) // m) * m


def _choose_time_block(t, n_pad, h_pad, vmem_budget_bytes=4 << 20, max_unroll=32):
    """Largest divisor of t whose (double-buffered bf16) h block fits the budget."""
    per_step = n_pad * h_pad * 2 * 2          # bf16 block, x2 for double buffering
    cap = max(1, min(vmem_budget_bytes // per_step, max_unroll))
    return max(d for d in range(1, t + 1) if t % d == 0 and d <= cap)


def _aggr_gnn_kernel(hg_ref, a_ref, b_g_ref, w_out_ref, b_out_ref,
                     o_ref, acc_ref, *, tt, h_pad, inv_t):
    """One grid step = one block of `tt` time steps.

    hg_ref  : [N_pad, tt*H_pad] bf16  features already projected through W_g
                                      (time folded into the lane axis)
    a_ref   : [N_pad, N_pad]    bf16  adjacency (VMEM resident)
    b_g_ref : [1, H_pad]        f32   graph-conv bias
    w_out   : [H_pad, C_pad]    bf16  output projection
    b_out   : [1, C_pad]        f32
    o_ref   : [N_pad, C_pad]    f32   output (written on the last time block)
    acc_ref : [N_pad, H_pad]    f32   temporal accumulator (persists across grid)
    """
    tb = pl.program_id(0)
    n_tb = pl.num_programs(0)

    @pl.when(tb == 0)
    def _():
        acc_ref[...] = jnp.zeros_like(acc_ref)

    # Graph aggregation for all tt time steps in ONE lane-dense MXU matmul:
    #   ah[:, t*H_pad:(t+1)*H_pad] == A @ (h_t @ W_g)
    ah = jnp.dot(a_ref[...], hg_ref[...], preferred_element_type=jnp.float32)

    # Per-time-step bias + ReLU, accumulated over time (pure VPU work; slices
    # are lane-tile aligned since H_pad % 128 == 0, so no relayouts).
    acc = acc_ref[...]
    for t in range(tt):
        acc = acc + jnp.maximum(ah[:, t * h_pad:(t + 1) * h_pad] + b_g_ref[...], 0.0)
    acc_ref[...] = acc

    @pl.when(tb == n_tb - 1)
    def _():
        mean_h = (acc_ref[...] * inv_t).astype(jnp.bfloat16)
        out = jnp.dot(mean_h, w_out_ref[...], preferred_element_type=jnp.float32)
        o_ref[...] = (out + b_out_ref[...]).astype(o_ref.dtype)


def aggr_gnn_forward(h_g, adj, b_g, w_out, b_out, *, vmem_budget_bytes=4 << 20):
    """h_g: [N, T, H] f32 features already projected through W_g; adj: [N, N] f32.

    Returns mean_t( ReLU(adj @ h_g[:, t] + b_g) ) @ w_out + b_out  -> [N, C] f32.
    """
    N, T, H = h_g.shape
    C = w_out.shape[1]

    # Lane-dense padding: H, C -> multiples of 128; N -> multiple of 16 (bf16 sublanes).
    H_pad = max(128, _round_up(H, 128))
    C_pad = max(128, _round_up(C, 128))
    N_pad = max(16, _round_up(N, 16))

    tt = _choose_time_block(T, N_pad, H_pad, vmem_budget_bytes)

    def pad2(x, r, c):
        return jnp.pad(x, ((0, r - x.shape[0]), (0, c - x.shape[1])))

    h_p = jnp.pad(h_g, ((0, N_pad - N), (0, 0), (0, H_pad - H)))      # [N_pad, T, H_pad]
    h_flat = h_p.reshape(N_pad, T * H_pad).astype(jnp.bfloat16)       # time folded into lanes
    a_p = pad2(adj, N_pad, N_pad).astype(jnp.bfloat16)
    b_g_p = pad2(b_g, 1, H_pad)                                       # stays f32
    w_out_p = pad2(w_out, H_pad, C_pad).astype(jnp.bfloat16)
    b_out_p = pad2(b_out, 1, C_pad)                                   # stays f32

    kernel = functools.partial(_aggr_gnn_kernel, tt=tt, h_pad=H_pad, inv_t=1.0 / T)

    grid_spec = pltpu.PrefetchScalarGridSpec(
        num_scalar_prefetch=0,
        grid=(T // tt,),
        in_specs=[
            pl.BlockSpec((N_pad, tt * H_pad), lambda tb: (0, tb)),    # h_g, one time block
            pl.BlockSpec((N_pad, N_pad), lambda tb: (0, 0)),          # adjacency (resident)
            pl.BlockSpec((1, H_pad), lambda tb: (0, 0)),              # b_g
            pl.BlockSpec((H_pad, C_pad), lambda tb: (0, 0)),          # w_out
            pl.BlockSpec((1, C_pad), lambda tb: (0, 0)),              # b_out
        ],
        out_specs=pl.BlockSpec((N_pad, C_pad), lambda tb: (0, 0)),    # lane-dense output
        scratch_shapes=[pltpu.VMEM((N_pad, H_pad), jnp.float32)],
    )

    out = pl.pallas_call(
        kernel,
        out_shape=jax.ShapeDtypeStruct((N_pad, C_pad), jnp.float32),
        grid_spec=grid_spec,
        compiler_params=pltpu.CompilerParams(
            dimension_semantics=("arbitrary",)),      # time is a reduction axis
    )(h_flat, a_p, b_g_p, w_out_p, b_out_p)

    return out[:N, :C]


def _xavier(key, shape):
    fan_in, fan_out = shape[0], shape[1]
    limit = (6.0 / (fan_in + fan_out)) ** 0.5
    return jax.random.uniform(key, shape, jnp.float32, -limit, limit)


class UnsupervisedGNNPallas:
    """JAX/Pallas re-implementation of UnsupervisedGNN.forward."""

    def __init__(self, key, svc_feat_num, node_feat_num, instance_feat_num,
                 hidden_size, out_channels):
        ks = jax.random.split(key, 6)
        self.params = dict(
            w_svc=_xavier(ks[0], (svc_feat_num, hidden_size)),
            w_node=_xavier(ks[1], (node_feat_num, hidden_size)),
            w_pod=_xavier(ks[2], (instance_feat_num, hidden_size)),
            b_in=jnp.zeros((1, hidden_size), jnp.float32),
            w_g=_xavier(ks[3], (hidden_size, hidden_size)),
            b_g=jnp.zeros((1, hidden_size), jnp.float32),
            w_out=_xavier(ks[4], (hidden_size, out_channels)),
            b_out=jnp.zeros((1, out_channels), jnp.float32),
        )

    def _project_features(self, svc_feat, node_feat, pod_feat):
        # Plain per-type projection (used by the f32 reference).
        p = self.params
        return jnp.concatenate([
            jnp.einsum('ntf,fh->nth', svc_feat, p["w_svc"]),
            jnp.einsum('ntf,fh->nth', node_feat, p["w_node"]),
            jnp.einsum('ntf,fh->nth', pod_feat, p["w_pod"]),
        ], axis=0)                                   # [N_total, T, H] f32

    def forward(self, svc_feat, node_feat, pod_feat, adj,
                center_index, anomaly_index, graphs_index,
                time_series_sizes, anomaly_time_series):
        p = self.params
        # Compose W_g into the per-type projection weights (tiny GEMMs) and add
        # b_in @ W_g:  h_g == (X @ W_type + b_in) @ W_g  exactly, with no
        # assumption on adjacency normalization.  The kernel then only needs
        # A @ h_g per time step.
        h_g = jnp.concatenate([
            jnp.einsum('ntf,fh->nth', svc_feat, p["w_svc"] @ p["w_g"]),
            jnp.einsum('ntf,fh->nth', node_feat, p["w_node"] @ p["w_g"]),
            jnp.einsum('ntf,fh->nth', pod_feat, p["w_pod"] @ p["w_g"]),
        ], axis=0) + (p["b_in"] @ p["w_g"])          # [N_total, T, H] f32

        aggr_feat = aggr_gnn_forward(h_g, adj, p["b_g"], p["w_out"], p["b_out"])
        # Bookkeeping outputs are passed through, mirroring the reference forward.
        return (aggr_feat, center_index, anomaly_index, graphs_index,
                time_series_sizes, anomaly_time_series)


if __name__ == "__main__":
    key = jax.random.PRNGKey(0)
    k_model, k_svc, k_node, k_pod, k_adj = jax.random.split(key, 5)

    # Small deterministic problem: 4 svc nodes, 4 node nodes, 8 pod nodes.
    N_SVC, N_NODE, N_POD = 4, 4, 8
    T = 8
    F_SVC, F_NODE, F_POD = 6, 5, 7
    HIDDEN, OUT_CH = 32, 8
    N_TOTAL = N_SVC + N_NODE + N_POD

    svc_feat = jax.random.normal(k_svc, (N_SVC, T, F_SVC), jnp.float32)
    node_feat = jax.random.normal(k_node, (N_NODE, T, F_NODE), jnp.float32)
    pod_feat = jax.random.normal(k_pod, (N_POD, T, F_POD), jnp.float32)

    # Row-normalized dense adjacency (with self loops).
    a_raw = (jax.random.uniform(k_adj, (N_TOTAL, N_TOTAL)) > 0.6).astype(jnp.float32)
    a_raw = a_raw + jnp.eye(N_TOTAL, dtype=jnp.float32)
    adj = a_raw / jnp.sum(a_raw, axis=1, keepdims=True)

    center_index = jnp.array([0], jnp.int32)
    anomaly_index = jnp.array([2, 9], jnp.int32)
    graphs_index = jnp.arange(N_TOTAL, dtype=jnp.int32)
    time_series_sizes = jnp.array([T], jnp.int32)
    anomaly_time_series = jnp.array([3, 4], jnp.int32)

    model = UnsupervisedGNNPallas(k_model, F_SVC, F_NODE, F_POD, HIDDEN, OUT_CH)

    outs = model.forward(svc_feat, node_feat, pod_feat, adj,
                         center_index, anomaly_index, graphs_index,
                         time_series_sizes, anomaly_time_series)
    aggr_feat = jax.block_until_ready(outs[0])

    # Pure-JAX f32 reference of the same math (original op order, no fusions).
    p = model.params
    h_ref = model._project_features(svc_feat, node_feat, pod_feat)        # [N, T, H]
    hb = h_ref + p["b_in"]
    ah = jnp.einsum('ij,jth->ith', adj, hb)
    z = jnp.maximum(jnp.einsum('ith,hk->itk', ah, p["w_g"]) + p["b_g"], 0.0)
    ref = z.mean(axis=1) @ p["w_out"] + p["b_out"]

    # bf16 compute in the kernel -> relaxed tolerance vs f32 reference.
    assert aggr_feat.shape == (N_TOTAL, OUT_CH)
    assert jnp.allclose(aggr_feat, ref, atol=5e-2, rtol=5e-2), "mismatch vs JAX ref"

    print("KERNEL_OK")
</pallas_src>

<mosaic_0001>
module attributes {stable_mosaic.version = 11 : i64} {
  func.func @_aggr_gnn_kernel(%arg0: i32, %arg1: memref<16x1024xbf16, #tpu.memory_space<vmem>>, %arg2: memref<16x16xbf16, #tpu.memory_space<vmem>>, %arg3: memref<1x128xf32, #tpu.memory_space<vmem>>, %arg4: memref<128x128xbf16, #tpu.memory_space<vmem>>, %arg5: memref<1x128xf32, #tpu.memory_space<vmem>>, %arg6: memref<16x128xf32, #tpu.memory_space<vmem>>, %arg7: memref<16x128xf32, #tpu.memory_space<vmem>>) attributes {dimension_semantics = [#tpu.dimension_semantics<arbitrary>], iteration_bounds = array<i64: 1>, scalar_prefetch = 0 : i64, scratch_operands = 1 : i64, tpu.core_type = #tpu.core_type<tc>, window_params = [{transform_indices = @transform_0, window_bounds = array<i64: 16, 1024>}, {pipeline_mode = #tpu.pipeline_mode<synchronous>, transform_indices = @transform_1, window_bounds = array<i64: 16, 16>}, {pipeline_mode = #tpu.pipeline_mode<synchronous>, transform_indices = @transform_2, window_bounds = array<i64: 1, 128>}, {pipeline_mode = #tpu.pipeline_mode<synchronous>, transform_indices = @transform_3, window_bounds = array<i64: 128, 128>}, {pipeline_mode = #tpu.pipeline_mode<synchronous>, transform_indices = @transform_4, window_bounds = array<i64: 1, 128>}, {pipeline_mode = #tpu.pipeline_mode<synchronous>, transform_indices = @transform_5, window_bounds = array<i64: 16, 128>}]} {
    %c0_i32 = arith.constant 0 : i32
    %0 = arith.cmpi eq, %arg0, %c0_i32 : i32
    %1 = arith.extui %0 : i1 to i32
    %c0_i32_0 = arith.constant 0 : i32
    %2 = arith.cmpi ne, %1, %c0_i32_0 : i32
    scf.if %2 {
      %cst_34 = arith.constant 0.000000e+00 : f32
      %67 = vector.broadcast %cst_34 : f32 to vector<16x128xf32>
      %c0_35 = arith.constant 0 : index
      %c0_36 = arith.constant 0 : index
      %68 = vector.load %arg7[%c0_35, %c0_36] : memref<16x128xf32, #tpu.memory_space<vmem>>, vector<16x128xf32>
      tpu.vector_store %arg7[%c0_35, %c0_36], %67 {strides = array<i32>} : memref<16x128xf32, #tpu.memory_space<vmem>>, vector<16x128xf32>,
    } else {
    }
    %c0 = arith.constant 0 : index
    %c0_1 = arith.constant 0 : index
    %3 = vector.load %arg2[%c0, %c0_1] : memref<16x16xbf16, #tpu.memory_space<vmem>>, vector<16x16xbf16>
    %c0_2 = arith.constant 0 : index
    %c0_3 = arith.constant 0 : index
    %4 = vector.load %arg1[%c0_2, %c0_3] : memref<16x1024xbf16, #tpu.memory_space<vmem>>, vector<16x1024xbf16>
    %cst = arith.constant dense<0.000000e+00> : vector<16x1024xf32>
    %5 = tpu.matmul %3, %4, %cst {dimension_numbers = #tpu.dot_dimension_numbers<[1], [0], [0], [1], [0, 0, 1, 1], [], []>} : vector<16x16xbf16>, vector<16x1024xbf16>, vector<16x1024xf32> -> vector<16x1024xf32>
    %c0_4 = arith.constant 0 : index
    %c0_5 = arith.constant 0 : index
    %6 = vector.load %arg7[%c0_4, %c0_5] : memref<16x128xf32, #tpu.memory_space<vmem>>, vector<16x128xf32>
    %7 = vector.extract_strided_slice %5 {offsets = [0, 0], sizes = [16, 128], strides = [1, 1]} : vector<16x1024xf32> to vector<16x128xf32>
    %c0_6 = arith.constant 0 : index
    %c0_7 = arith.constant 0 : index
    %8 = vector.load %arg3[%c0_6, %c0_7] : memref<1x128xf32, #tpu.memory_space<vmem>>, vector<1x128xf32>
    %9 = vector.broadcast %8 : vector<1x128xf32> to vector<16x128xf32>
    %10 = arith.addf %7, %9 : vector<16x128xf32>
    %cst_8 = arith.constant 0.000000e+00 : f32
    %11 = vector.broadcast %cst_8 : f32 to vector<16x128xf32>
    %12 = arith.maximumf %10, %11 : vector<16x128xf32>
    %13 = arith.addf %6, %12 : vector<16x128xf32>
    %14 = vector.extract_strided_slice %5 {offsets = [0, 128], sizes = [16, 128], strides = [1, 1]} : vector<16x1024xf32> to vector<16x128xf32>
    %c0_9 = arith.constant 0 : index
    %c0_10 = arith.constant 0 : index
    %15 = vector.load %arg3[%c0_9, %c0_10] : memref<1x128xf32, #tpu.memory_space<vmem>>, vector<1x128xf32>
    %16 = vector.broadcast %15 : vector<1x128xf32> to vector<16x128xf32>
    %17 = arith.addf %14, %16 : vector<16x128xf32>
    %cst_11 = arith.constant 0.000000e+00 : f32
    %18 = vector.broadcast %cst_11 : f32 to vector<16x128xf32>
    %19 = arith.maximumf %17, %18 : vector<16x128xf32>
    %20 = arith.addf %13, %19 : vector<16x128xf32>
    %21 = vector.extract_strided_slice %5 {offsets = [0, 256], sizes = [16, 128], strides = [1, 1]} : vector<16x1024xf32> to vector<16x128xf32>
    %c0_12 = arith.constant 0 : index
    %c0_13 = arith.constant 0 : index
    %22 = vector.load %arg3[%c0_12, %c0_13] : memref<1x128xf32, #tpu.memory_space<vmem>>, vector<1x128xf32>
    %23 = vector.broadcast %22 : vector<1x128xf32> to vector<16x128xf32>
    %24 = arith.addf %21, %23 : vector<16x128xf32>
    %cst_14 = arith.constant 0.000000e+00 : f32
    %25 = vector.broadcast %cst_14 : f32 to vector<16x128xf32>
    %26 = arith.maximumf %24, %25 : vector<16x128xf32>
    %27 = arith.addf %20, %26 : vector<16x128xf32>
    %28 = vector.extract_strided_slice %5 {offsets = [0, 384], sizes = [16, 128], strides = [1, 1]} : vector<16x1024xf32> to vector<16x128xf32>
    %c0_15 = arith.constant 0 : index
    %c0_16 = arith.constant 0 : index
    %29 = vector.load %arg3[%c0_15, %c0_16] : memref<1x128xf32, #tpu.memory_space<vmem>>, vector<1x128xf32>
    %30 = vector.broadcast %29 : vector<1x128xf32> to vector<16x128xf32>
    %31 = arith.addf %28, %30 : vector<16x128xf32>
    %cst_17 = arith.constant 0.000000e+00 : f32
    %32 = vector.broadcast %cst_17 : f32 to vector<16x128xf32>
    %33 = arith.maximumf %31, %32 : vector<16x128xf32>
    %34 = arith.addf %27, %33 : vector<16x128xf32>
    %35 = vector.extract_strided_slice %5 {offsets = [0, 512], sizes = [16, 128], strides = [1, 1]} : vector<16x1024xf32> to vector<16x128xf32>
    %c0_18 = arith.constant 0 : index
    %c0_19 = arith.constant 0 : index
    %36 = vector.load %arg3[%c0_18, %c0_19] : memref<1x128xf32, #tpu.memory_space<vmem>>, vector<1x128xf32>
    %37 = vector.broadcast %36 : vector<1x128xf32> to vector<16x128xf32>
    %38 = arith.addf %35, %37 : vector<16x128xf32>
    %cst_20 = arith.constant 0.000000e+00 : f32
    %39 = vector.broadcast %cst_20 : f32 to vector<16x128xf32>
    %40 = arith.maximumf %38, %39 : vector<16x128xf32>
    %41 = arith.addf %34, %40 : vector<16x128xf32>
    %42 = vector.extract_strided_slice %5 {offsets = [0, 640], sizes = [16, 128], strides = [1, 1]} : vector<16x1024xf32> to vector<16x128xf32>
    %c0_21 = arith.constant 0 : index
    %c0_22 = arith.constant 0 : index
    %43 = vector.load %arg3[%c0_21, %c0_22] : memref<1x128xf32, #tpu.memory_space<vmem>>, vector<1x128xf32>
    %44 = vector.broadcast %43 : vector<1x128xf32> to vector<16x128xf32>
    %45 = arith.addf %42, %44 : vector<16x128xf32>
    %cst_23 = arith.constant 0.000000e+00 : f32
    %46 = vector.broadcast %cst_23 : f32 to vector<16x128xf32>
    %47 = arith.maximumf %45, %46 : vector<16x128xf32>
    %48 = arith.addf %41, %47 : vector<16x128xf32>
    %49 = vector.extract_strided_slice %5 {offsets = [0, 768], sizes = [16, 128], strides = [1, 1]} : vector<16x1024xf32> to vector<16x128xf32>
    %c0_24 = arith.constant 0 : index
    %c0_25 = arith.constant 0 : index
    %50 = vector.load %arg3[%c0_24, %c0_25] : memref<1x128xf32, #tpu.memory_space<vmem>>, vector<1x128xf32>
    %51 = vector.broadcast %50 : vector<1x128xf32> to vector<16x128xf32>
    %52 = arith.addf %49, %51 : vector<16x128xf32>
    %cst_26 = arith.constant 0.000000e+00 : f32
    %53 = vector.broadcast %cst_26 : f32 to vector<16x128xf32>
    %54 = arith.maximumf %52, %53 : vector<16x128xf32>
    %55 = arith.addf %48, %54 : vector<16x128xf32>
    %56 = vector.extract_strided_slice %5 {offsets = [0, 896], sizes = [16, 128], strides = [1, 1]} : vector<16x1024xf32> to vector<16x128xf32>
    %c0_27 = arith.constant 0 : index
    %c0_28 = arith.constant 0 : index
    %57 = vector.load %arg3[%c0_27, %c0_28] : memref<1x128xf32, #tpu.memory_space<vmem>>, vector<1x128xf32>
    %58 = vector.broadcast %57 : vector<1x128xf32> to vector<16x128xf32>
    %59 = arith.addf %56, %58 : vector<16x128xf32>
    %cst_29 = arith.constant 0.000000e+00 : f32
    %60 = vector.broadcast %cst_29 : f32 to vector<16x128xf32>
    %61 = arith.maximumf %59, %60 : vector<16x128xf32>
    %62 = arith.addf %55, %61 : vector<16x128xf32>
    %c0_30 = arith.constant 0 : index
    %c0_31 = arith.constant 0 : index
    %63 = vector.load %arg7[%c0_30, %c0_31] : memref<16x128xf32, #tpu.memory_space<vmem>>, vector<16x128xf32>
    tpu.vector_store %arg7[%c0_30, %c0_31], %62 {strides = array<i32>} : memref<16x128xf32, #tpu.memory_space<vmem>>, vector<16x128xf32>,
    %c0_i32_32 = arith.constant 0 : i32
    %64 = arith.cmpi eq, %arg0, %c0_i32_32 : i32
    %65 = arith.extui %64 : i1 to i32
    %c0_i32_33 = arith.constant 0 : i32
    %66 = arith.cmpi ne, %65, %c0_i32_33 : i32
    scf.if %66 {
      %c0_34 = arith.constant 0 : index
      %c0_35 = arith.constant 0 : index
      %67 = vector.load %arg7[%c0_34, %c0_35] : memref<16x128xf32, #tpu.memory_space<vmem>>, vector<16x128xf32>
      %cst_36 = arith.constant 1.250000e-01 : f32
      %68 = vector.broadcast %cst_36 : f32 to vector<16x128xf32>
      %69 = arith.mulf %67, %68 : vector<16x128xf32>
      %70 = arith.truncf %69 : vector<16x128xf32> to vector<16x128xbf16>
      %c0_37 = arith.constant 0 : index
      %c0_38 = arith.constant 0 : index
      %71 = vector.load %arg4[%c0_37, %c0_38] : memref<128x128xbf16, #tpu.memory_space<vmem>>, vector<128x128xbf16>
      %cst_39 = arith.constant dense<0.000000e+00> : vector<16x128xf32>
      %72 = tpu.matmul %70, %71, %cst_39 {dimension_numbers = #tpu.dot_dimension_numbers<[1], [0], [0], [1], [0, 0, 1, 1], [], []>} : vector<16x128xbf16>, vector<128x128xbf16>, vector<16x128xf32> -> vector<16x128xf32>
      %c0_40 = arith.constant 0 : index
      %c0_41 = arith.constant 0 : index
      %73 = vector.load %arg5[%c0_40, %c0_41] : memref<1x128xf32, #tpu.memory_space<vmem>>, vector<1x128xf32>
      %74 = vector.broadcast %73 : vector<1x128xf32> to vector<16x128xf32>
      %75 = arith.addf %72, %74 : vector<16x128xf32>
      %c0_42 = arith.constant 0 : index
      %c0_43 = arith.constant 0 : index
      %76 = vector.load %arg6[%c0_42, %c0_43] : memref<16x128xf32, #tpu.memory_space<vmem>>, vector<16x128xf32>
      tpu.vector_store %arg6[%c0_42, %c0_43], %75 {strides = array<i32>} : memref<16x128xf32, #tpu.memory_space<vmem>>, vector<16x128xf32>,
    } else {
    }
    return
  }
  func.func @transform_0(%arg0: i32) -> (i32, i32) {
    %c0_i32 = arith.constant 0 : i32
    %c0_i32_0 = arith.constant 0 : i32
    return %c0_i32, %arg0 : i32, i32
  }
  func.func @transform_1(%arg0: i32) -> (i32, i32) {
    %c0_i32 = arith.constant 0 : i32
    %c0_i32_0 = arith.constant 0 : i32
    %c0_i32_1 = arith.constant 0 : i32
    return %c0_i32, %c0_i32_0 : i32, i32
  }
  func.func @transform_2(%arg0: i32) -> (i32, i32) {
    %c0_i32 = arith.constant 0 : i32
    %c0_i32_0 = arith.constant 0 : i32
    %c0_i32_1 = arith.constant 0 : i32
    return %c0_i32, %c0_i32_0 : i32, i32
  }
  func.func @transform_3(%arg0: i32) -> (i32, i32) {
    %c0_i32 = arith.constant 0 : i32
    %c0_i32_0 = arith.constant 0 : i32
    %c0_i32_1 = arith.constant 0 : i32
    return %c0_i32, %c0_i32_0 : i32, i32
  }
  func.func @transform_4(%arg0: i32) -> (i32, i32) {
    %c0_i32 = arith.constant 0 : i32
    %c0_i32_0 = arith.constant 0 : i32
    %c0_i32_1 = arith.constant 0 : i32
    return %c0_i32, %c0_i32_0 : i32, i32
  }
  func.func @transform_5(%arg0: i32) -> (i32, i32) {
    %c0_i32 = arith.constant 0 : i32
    %c0_i32_0 = arith.constant 0 : i32
    %c0_i32_1 = arith.constant 0 : i32
    return %c0_i32, %c0_i32_0 : i32, i32
  }
}

</mosaic_0001>

<bundles_post_ra>
// kernel: tpu_custom_call.1
= control target key start
LH: loop header
LB: loop body
LE: loop exit
PB: predicated region body
PF: predicated region fallthrough
CT: control target
= control target key end

     0   :  { %10 = vsyncpa [#allocation4], 0  ;;  %s687_s0 = inlined_call_operand.hbm [shape: bf16[16,1024], index: 0, kind: input, shape index: {}]   ;;  %s688_s1 = inlined_call_operand.hbm [shape: bf16[16,16], index: 1, kind: input, shape index: {}]   ;;  %s689_s2 = inlined_call_operand.vmem [shape: f32[1,128], index: 2, kind: input, shape index: {}]   ;;  %s690_s3 = inlined_call_operand.hbm [shape: bf16[128,128], index: 3, kind: input, shape index: {}]   ;;  %s691_s4 = inlined_call_operand.vmem [shape: f32[1,128], index: 4, kind: input, shape index: {}]   ;;  %s692_s5 = inlined_call_operand.hbm [shape: f32[16,128], index: 5, kind: output, shape index: {}]  }
   0x1   :  { %11 = vsyncpa [#allocation7], 0  ;;  %s30_s20 = sshll.u32 %s688_s1, 4  ;;  %s31_s20 = int_to_ptr.hbm [resolvable:$true] %s30_s20 }
   0x2   :  { %12 = vsyncpa [#allocation5], 0  ;;  %s621_s21 = smov [#allocation6]   ;;  %s17_s25 = sshll.u32 %s687_s0, 4  ;;  %s18_s25 = int_to_ptr.hbm [resolvable:$true] %s17_s25 }
   0x3   :  { %s32_s22 = sshll.u32 %s621_s21, 4  ;;  %s622_s26 = smov 64   ;;  %s33_s22 = int_to_ptr.vmem [resolvable:$true] %s32_s22 }
   0x4   :  { %s623_s27 = smov 4   ;;  %s624_s28 = smov [#allocation3]  }
   0x5   :  { %38 = dma.hbm_to_vmem [thread:$0]  %s31_s20, 128, %s33_s22, [#allocation7], %s622_s26, %s622_s26, %s623_s27  }
   0x6   :  { %s19_s29 = sshll.u32 %s624_s28, 4  ;;  %s625_s30 = smov 512   ;;  %s20_s29 = int_to_ptr.vmem [resolvable:$true] %s19_s29 }
   0x7   :  { %s626_s6 = smov 32   ;;  %s45_s8 = sshll.u32 %s690_s3, 4  ;;  %s46_s8 = int_to_ptr.hbm [resolvable:$true] %s45_s8 }
   0x8   :  { %25 = dma.hbm_to_vmem [thread:$0]  %s18_s25, 1024, %s20_s29, [#allocation4], %s625_s30, %s625_s30, %s626_s6  }
   0x9   :  { %s627_s9 = smov [#allocation8]  }
   0xa   :  { %s47_s10 = sshll.u32 %s627_s9, 4  ;;  %s48_s10 = int_to_ptr.vmem [resolvable:$true] %s47_s10 }
   0xb   :  { %53 = dma.hbm_to_vmem [thread:$0]  %s46_s8, 1024, %s48_s10, [#allocation7], %s622_s26, %s622_s26, %s623_s27  }
   0xc   :  { %615 = dma.done.wait [#allocation4], 1024  }
   0xd   :  { %616 = vsyncadd [#allocation4], 4294966272 }
   0xe   :  { %617 = dma.done.wait [#allocation7], 1152  }
   0xf   :  { %618 = vsyncadd [#allocation7], 4294966144  ;;  %v420_v0 = vld [vmem:[#allocation3] sm:$0xf]  ;;  %vm130_vm0 = vcmask 130048   ;;  %v505_v26 = vld [vmem:[#allocation8 + $0x30] sm:$0xff] }
  0x10   :  { %v495_v1 = vld [vmem:[#allocation3 + $0x1c] sm:$0xf0]  ;;  %v491_v4 = vld [vmem:[#allocation3 + $0x4] sm:$0xf]  ;;  %v428_v6 = vld [vmem:[#allocation3 + $0x8] sm:$0xf] }
  0x11   :  { %v490_v2 = vld [vmem:[#allocation6] sm:$0xff]  ;;  %v421_v3 = vor.u32 %v495_v1, %v420_v0  ;;  %v496_v8 = vld [vmem:[#allocation3 + $0x24] sm:$0xf0]  ;;  %v492_v9 = vld [vmem:[#allocation3 + $0xc] sm:$0xf]  ;;  %s628_s12 = smov [#allocation9]  }
  0x12   :  { %v422_v5 = vld [vmem:[#allocation3 + $0x20] sm:$0xf0]  ;;  %v430_v10 = vld [vmem:[#allocation3 + $0x28] sm:$0xf0]  ;;  %v429_v11 = vor.u32 %v496_v8, %v428_v6  ;;  %v444_v13 = vld [vmem:[#allocation3 + $0x18] sm:$0xf] }
  0x13   :  { %v425_v7 = vor.u32 %v491_v4, %v422_v5  ;;  %141 = vmatpush.bf16.msra.mxu1 %v421_v3  ;;  %v433_v12 = vor.u32 %v492_v9, %v430_v10  ;;  %v498_v14 = vld [vmem:[#allocation3 + $0x34] sm:$0xf0]  ;;  %v494_v15 = vld [vmem:[#allocation3 + $0x1c] sm:$0xf]  ;;  %v493_v18 = vld [vmem:[#allocation3 + $0x14] sm:$0xf] }
  0x14   :  { %v445_v16 = vor.u32 %v498_v14, %v444_v13  ;;  %v446_v17 = vld [vmem:[#allocation3 + $0x38] sm:$0xf0]  ;;  %v438_v19 = vld [vmem:[#allocation3 + $0x30] sm:$0xf0]  ;;  %169 = vmatpush.bf16.msra.mxu2 %v429_v11  ;;  %v436_v22 = vld [vmem:[#allocation3 + $0x10] sm:$0xf] }
  0x15   :  { %183 = vmatpush.bf16.msra.mxu3 %v433_v12  ;;  %v449_v20 = vor.u32 %v494_v15, %v446_v17  ;;  %v441_v21 = vor.u32 %v493_v18, %v438_v19  ;;  %v497_v23 = vld [vmem:[#allocation3 + $0x2c] sm:$0xf0]  ;;  %v506_v25 = vld [vmem:[#allocation8 + $0x38] sm:$0xff]  ;;  %v503_v29 = vld [vmem:[#allocation8 + $0x20] sm:$0xff]  ;;  %s398_s13 = sshll.u32 %s628_s12, 4  ;;  %s400_s16 = sshll.u32 %s692_s5, 4  ;;  %s399_s13 = int_to_ptr.vmem [resolvable:$true] %s398_s13  ;;  %s401_s16 = int_to_ptr.hbm [resolvable:$true] %s400_s16 }
  0x16   :  { %450 = vmatmul.msk.bf16.vlgmr.msra.gmra.mxu1 %vm130_vm0, %v490_v2  ;;  %v437_v24 = vor.u32 %v497_v23, %v436_v22  ;;  %v504_v27 = vld [vmem:[#allocation8 + $0x28] sm:$0xff]  ;;  %v502_v30 = vld [vmem:[#allocation8 + $0x18] sm:$0xff]  ;;  %v501_v34 = vld [vmem:[#allocation8 + $0x10] sm:$0xff]  ;;  %s629_s17 = smov 128   ;;  %s630_s18 = smov 8  }
  0x17   :  { %155 = vmatpush.bf16.msrb.mxu1 %v425_v7  ;;  %452 = vmatmul.msk.bf16.vlgmr.msra.gmra.mxu2 %vm130_vm0, %v490_v2  ;;  %v500_v35 = vld [vmem:[#allocation8 + $0x8] sm:$0xff]  ;;  %v517_v36 = vld [vmem:[%s689_s2] ss:$0 sm:$0xff]  ;;  %v499_v38 = vld [vmem:[#allocation8] sm:$0xff] }
  0x18   :  { %225 = vmatpush.bf16.msrb.mxu2 %v445_v16  ;;  %453 = vmatmul.msk.bf16.vlgmr.msra.gmra.mxu3 %vm130_vm0, %v490_v2 }
  0x19   :  { %239 = vmatpush.bf16.msrb.mxu3 %v449_v20  ;;  %197 = vmatpush.bf16.msra.mxu0 %v437_v24 }
  0x1b   :  { %211 = vmatpush.bf16.msra.mxu1 %v441_v21 }
  0x1c   :  { %454 = vmatmul.msk.bf16.vlgmr.msra.gmra.mxu0 %vm130_vm0, %v490_v2 }
  0x1d   :  { %378 = vmatpush.bf16.msrb.mxu0 %v506_v25 }
  0x21   :  { %379 = vmatpush.bf16.msrb.mxu0 %v505_v26 }
  0x25   :  { %380 = vmatpush.bf16.msrb.mxu0 %v504_v27 }
  0x26   :  { %451 = vmatmul.msk.bf16.vlgmr.msrb.gmra.mxu1 %vm130_vm0, %v490_v2 }
  0x27   :  { %456 = vmatmul.msk.bf16.vlgmr.msrb.gmra.mxu2 %vm130_vm0, %v490_v2 }
  0x28   :  { %457 = vmatmul.msk.bf16.vlgmr.msrb.gmra.mxu3 %vm130_vm0, %v490_v2 }
  0x29   :  { %381 = vmatpush.bf16.msrb.mxu0 %v503_v29 }
  0x2d   :  { %382 = vmatpush.bf16.msrb.mxu0 %v502_v30 }
  0x31   :  { %383 = vmatpush.bf16.msrb.mxu0 %v501_v34 }
  0x35   :  { %384 = vmatpush.bf16.msrb.mxu0 %v500_v35  ;;  %v518_v35 = vld [vmem:[%s691_s4] ss:$0 sm:$0xff] }
  0x36   :  { %455 = vmatmul.msk.bf16.vlgmr.msra.gmra.mxu1 %vm130_vm0, %v490_v2 }
  0x39   :  { %385 = vmatpush.bf16.msrb.mxu0 %v499_v38 }
  0x93   :  { %v143_v28 = vpop.f32.mrf.mxu1 }
  0x94   :  { %v252_v41 = vadd.f32 %v517_v36, %v143_v28 }
  0x96   :  { %v254_v46 = vmax.f32 %v252_v41, 0.0 }
  0x99   :  { %v199_v45 = vpop.f32.mrf.mxu0 }
  0x9a   :  { %v171_v32 = vpop.f32.mrf.mxu2  ;;  %v276_v54 = vadd.f32 %v517_v36, %v199_v45 }
  0x9b   :  { %v145_v31 = vpop.f32.mrf.mxu1  ;;  %v185_v33 = vpop.f32.mrf.mxu3  ;;  %v264_v43 = vadd.f32 %v517_v36, %v171_v32 }
  0x9c   :  { %v253_v47 = vadd.f32 %v517_v36, %v145_v31  ;;  %v270_v50 = vadd.f32 %v517_v36, %v185_v33  ;;  %v278_v62 = vmax.f32 %v276_v54, 0.0 }
  0x9d   :  { %v266_v49 = vmax.f32 %v264_v43, 0.0 }
  0x9e   :  { %v255_v56 = vmax.f32 %v253_v47, 0.0  ;;  %v272_v57 = vmax.f32 %v270_v50, 0.0 }
  0xa1   :  { %v201_v63 = vpop.f32.mrf.mxu0 }
  0xa2   :  { %v173_v40 = vpop.f32.mrf.mxu2  ;;  %v277_v7 = vadd.f32 %v517_v36, %v201_v63 }
  0xa3   :  { %v157_v37 = vpop.f32.mrf.mxu1  ;;  %v187_v42 = vpop.f32.mrf.mxu3  ;;  %v265_v59 = vadd.f32 %v517_v36, %v173_v40 }
  0xa4   :  { %v258_v39 = vadd.f32 %v517_v36, %v157_v37  ;;  %v271_v2 = vadd.f32 %v517_v36, %v187_v42  ;;  %v279_v15 = vmax.f32 %v277_v7, 0.0 }
  0xa5   :  { %v267_v1 = vmax.f32 %v265_v59, 0.0 }
  0xa6   :  { %v260_v44 = vmax.f32 %v258_v39, 0.0  ;;  %v273_v9 = vmax.f32 %v271_v2, 0.0 }
  0xa8   :  { %v262_v51 = vadd.f32 %v260_v44, %v254_v46 }
  0xaa   :  { %v227_v55 = vpop.f32.mrf.mxu2  ;;  %v268_v58 = vadd.f32 %v266_v49, %v262_v51 }
  0xab   :  { %v159_v48 = vpop.f32.mrf.mxu1  ;;  %v241_v60 = vpop.f32.mrf.mxu3  ;;  %v288_v6 = vadd.f32 %v517_v36, %v227_v55 }
  0xac   :  { %v259_v52 = vadd.f32 %v517_v36, %v159_v48  ;;  %v274_v3 = vadd.f32 %v272_v57, %v268_v58  ;;  %v294_v11 = vadd.f32 %v517_v36, %v241_v60 }
  0xad   :  { %v290_v13 = vmax.f32 %v288_v6, 0.0 }
  0xae   :  { %v261_v53 = vmax.f32 %v259_v52, 0.0  ;;  %v280_v10 = vadd.f32 %v278_v62, %v274_v3  ;;  %v296_v21 = vmax.f32 %v294_v11, 0.0 }
  0xb0   :  { %v263_v61 = vadd.f32 %v261_v53, %v255_v56 }
  0xb2   :  { %v269_v5 = vadd.f32 %v267_v1, %v263_v61  ;;  %v229_v12 = vpop.f32.mrf.mxu2 }
  0xb3   :  { %v213_v0 = vpop.f32.mrf.mxu1  ;;  %v243_v17 = vpop.f32.mrf.mxu3  ;;  %v289_v19 = vadd.f32 %v517_v36, %v229_v12 }
  0xb4   :  { %v282_v4 = vadd.f32 %v517_v36, %v213_v0  ;;  %v275_v14 = vadd.f32 %v273_v9, %v269_v5  ;;  %v295_v24 = vadd.f32 %v517_v36, %v243_v17 }
  0xb5   :  { %v291_v26 = vmax.f32 %v289_v19, 0.0 }
  0xb6   :  { %v284_v8 = vmax.f32 %v282_v4, 0.0  ;;  %v281_v22 = vadd.f32 %v279_v15, %v275_v14  ;;  %v297_v28 = vmax.f32 %v295_v24, 0.0 }
  0xb8   :  { %v286_v16 = vadd.f32 %v284_v8, %v280_v10 }
  0xba   :  { %v292_v23 = vadd.f32 %v290_v13, %v286_v16 }
  0xbb   :  { %v215_v18 = vpop.f32.mrf.mxu1 }
  0xbc   :  { %v283_v20 = vadd.f32 %v517_v36, %v215_v18  ;;  %v298_v30 = vadd.f32 %v296_v21, %v292_v23 }
  0xbe   :  { %v285_v25 = vmax.f32 %v283_v20, 0.0  ;;  %v307_v32 = vmul.f32 0.125, %v298_v30 }
  0xc0   :  { %v287_v27 = vadd.f32 %v285_v25, %v281_v22 }
  0xc2   :  { %v293_v29 = vadd.f32 %v291_v26, %v287_v27 }
  0xc4   :  { %v299_v31 = vadd.f32 %v297_v28, %v293_v29 }
  0xc6   :  { %v308_v33 = vmul.f32 0.125, %v299_v31 }
  0xc8   :  { %v309_v34 = vpack.c.bf16 %v308_v33, %v307_v32 }
  0xca   :  { %386 = vmatmul.bf16.vlgmr.msrb.gmra.mxu0 %v309_v34 }
 0x147   :  { %v387_v37 = vpop.f32.mrf.mxu0 }
 0x148   :  { %v388_v38 = vadd.f32 %v518_v35, %v387_v37 }
 0x14a   :  { %392 = vst [vmem:[#allocation9] sm:$0xff] %v388_v38 }
 0x14f   :  { %v389_v36 = vpop.f32.mrf.mxu0 }
 0x150   :  { %v390_v39 = vadd.f32 %v518_v35, %v389_v36 }
 0x152   :  { %393 = vst [vmem:[#allocation9 + $0x8] sm:$0xff] %v390_v39 }
 0x153   :  { %406 = dma.vmem_to_hbm [thread:$0]  %s399_s13, 256, %s401_s16, [#allocation5], %s629_s17, %s629_s17, %s630_s18  }
 0x154   :  { %619 = dma.done.wait [#allocation5], 256  }
 0x155   :  { %620 = vsyncadd [#allocation5], 4294967040 }
 0x156   :  { %411 = vsyncpa [#allocation4], 1 }
 0x157   :  { %412 = vsyncpa [#allocation7], 1 }
 0x158   :  { %413 = vsyncpa [#allocation5], 1 }

</bundles_post_ra>
